<compile_context>
chip_gen: v6e
topology: v6e:2x2x1
jax: 0.10.0
libtpu: 0.0.40
codegen_flags: <defaults>
</compile_context>

<pallas_src>
import jax
import jax.numpy as jnp
import numpy as np
from jax import lax
from jax.experimental import pallas as pl
from jax.experimental.pallas import tpu as pltpu


def _lstm_chunk_kernel(xp_ref, h0_ref, c0_ref, whh_ref, wfc_ref, bfc_ref,
                       y_ref, h_sc, c_sc, hs_sc):
    """One grid step = one chunk of T_chunk timesteps of the recurrence.

    xp_ref : (Tc, B, 4H)  precomputed x @ W_ih^T + (b_ih + b_hh), gate order
                          [i, f, o, g], time-major chunk
    h0_ref : (B, H)       initial hidden state (used only at chunk 0)
    c0_ref : (B, H)       initial cell state  (used only at chunk 0)
    whh_ref: (H, 4H)      W_hh^T, gate order [i, f, o, g]
    wfc_ref: (1, H)       fc weight (PyTorch layout)
    bfc_ref: (1,)         fc bias, SMEM scalar
    y_ref  : (Tc, B)      sigmoid(fc(h_t)) for this chunk (lane-dense, no
                          size-1 trailing dim)
    h_sc   : (B, H)       persistent VMEM carry of h across chunks
    c_sc   : (B, H)       persistent VMEM carry of c across chunks
    hs_sc  : (Tc, B, H)   VMEM scratch holding this chunk's hidden states
    """
    t_chunk = xp_ref.shape[0]
    H = h_sc.shape[-1]

    # Seed the carried state from h_0 / c_0 on the first chunk only.
    @pl.when(pl.program_id(0) == 0)
    def _():
        h_sc[...] = h0_ref[...]
        c_sc[...] = c0_ref[...]

    whh = whh_ref[...]                                   # loop-invariant (H, 4H)

    def step(t, carry):
        h_prev, c_prev = carry
        # Only the hidden-state matmul stays on the serial critical path.
        gates = xp_ref[t] + jnp.dot(
            h_prev, whh, preferred_element_type=jnp.float32)       # (B, 4H)
        # Gate order is [i, f, o, g]: sigmoid over the first 3H lanes only,
        # tanh over the last H lanes only (no redundant transcendentals).
        sig = jax.nn.sigmoid(gates[:, :3 * H])
        i_g = sig[:, 0 * H:1 * H]
        f_g = sig[:, 1 * H:2 * H]
        o_g = sig[:, 2 * H:3 * H]
        g_g = jnp.tanh(gates[:, 3 * H:4 * H])
        c_new = f_g * c_prev + i_g * g_g
        h_new = o_g * jnp.tanh(c_new)
        hs_sc[t] = h_new
        return h_new, c_new

    # Bounded partial unroll: keeps LLO scheduling window without exploding
    # code size at production T_chunk.
    unroll = min(t_chunk, 8)
    h_f, c_f = lax.fori_loop(0, t_chunk, step, (h_sc[...], c_sc[...]),
                             unroll=unroll)
    h_sc[...] = h_f
    c_sc[...] = c_f

    # FC(hidden -> 1) + sigmoid once per chunk: weighted lane reduction over H,
    # single lane-dense (Tc, B) store (no per-step size-1 masked vst).
    hs = hs_sc[...]                                       # (Tc, B, H)
    logits = jnp.sum(hs * wfc_ref[...], axis=-1) + bfc_ref[0]      # (Tc, B)
    y_ref[...] = jax.nn.sigmoid(logits).astype(y_ref.dtype)


@jax.jit
def lstm_net_forward(x_btE, h_0, c_0, w_ih, w_hh, b_ih, b_hh, w_fc, b_fc):
    """
    x_btE : (B, T, E)  float32   (batch_first, like the PyTorch module)
    h_0   : (1, B, H)  float32   (num_layers=1)
    c_0   : (1, B, H)  float32
    w_ih  : (4H, E), w_hh : (4H, H), b_ih/b_hh : (4H,)   (PyTorch [i,f,g,o] order)
    w_fc  : (1, H),  b_fc : (1,)
    returns (B, T, 1) float32
    """
    B, T, E = x_btE.shape
    H = w_hh.shape[1]

    # Time-chunk size: multiple of 8 (f32 sublanes) so the (Tc, B) output block
    # is tile-aligned; for production pick a larger multiple (e.g. 64/128).
    t_chunk = min(T, 8)
    if T % t_chunk != 0:
        t_chunk = T   # TODO(synk): pad T to a chunk multiple for ragged T.
    n_chunks = T // t_chunk

    # Permute PyTorch gate order [i, f, g, o] -> [i, f, o, g] once, so the
    # kernel can do sigmoid(gates[:, :3H]) / tanh(gates[:, 3H:]).
    perm = jnp.concatenate([
        jnp.arange(0, H), jnp.arange(H, 2 * H),
        jnp.arange(3 * H, 4 * H), jnp.arange(2 * H, 3 * H)])
    w_ih_p = w_ih[perm]                          # (4H, E)
    w_hh_p = w_hh[perm]                          # (4H, H)
    bias_p = (b_ih + b_hh)[perm]                 # (4H,)

    # Input projection for ALL timesteps in one XLA matmul, produced directly
    # in time-major layout with the pre-hoisted bias.
    # (For v6e/v7x production: cast operands to bf16 here, keep f32 accumulate.)
    x_proj = jnp.einsum("bte,ge->tbg", x_btE, w_ih_p) + bias_p   # (T, B, 4H)

    h0 = h_0[0]                                  # (B, H)
    c0 = c_0[0]                                  # (B, H)
    whh_t = jnp.transpose(w_hh_p)                # (H, 4H)
    bfc = b_fc.reshape(1,)                       # (1,) scalar, lives in SMEM

    grid_spec = pltpu.PrefetchScalarGridSpec(
        num_scalar_prefetch=0,
        grid=(n_chunks,),                        # sequential time-chunk axis
        in_specs=[
            # x_proj chunks stream HBM->VMEM behind the recurrence.
            pl.BlockSpec((t_chunk, B, 4 * H), lambda t: (t, 0, 0)),
            pl.BlockSpec((B, H), lambda t: (0, 0)),              # h0
            pl.BlockSpec((B, H), lambda t: (0, 0)),              # c0
            pl.BlockSpec((H, 4 * H), lambda t: (0, 0)),          # W_hh^T
            pl.BlockSpec((1, H), lambda t: (0, 0)),              # fc weight
            pl.BlockSpec(memory_space=pltpu.MemorySpace.SMEM),   # fc bias
        ],
        # Lane-dense (Tc, B) output block; no size-1 trailing dim.
        out_specs=pl.BlockSpec((t_chunk, B), lambda t: (t, 0)),
        scratch_shapes=[
            pltpu.VMEM((B, H), jnp.float32),                     # h carry
            pltpu.VMEM((B, H), jnp.float32),                     # c carry
            pltpu.VMEM((t_chunk, B, H), jnp.float32),            # chunk hiddens
        ],
    )

    cost = pl.CostEstimate(
        flops=2 * T * B * H * (4 * H) + 12 * T * B * H + 2 * T * B * H,
        transcendentals=T * B * (5 * H) + T * B,
        bytes_accessed=4 * (T * B * 4 * H + T * B + 2 * B * H
                            + H * 4 * H + H + 1),
    )

    y_tb = pl.pallas_call(
        _lstm_chunk_kernel,
        out_shape=jax.ShapeDtypeStruct((T, B), jnp.float32),
        grid_spec=grid_spec,
        compiler_params=pltpu.CompilerParams(
            # Recurrence carries state across chunks -> sequential.
            # (v7x production: add a leading batch-parallel axis for the 2nd TC.)
            dimension_semantics=("arbitrary",)),
        cost_estimate=cost,
    )(x_proj, h0, c0, whh_t, w_fc, bfc)

    # (T, B) -> (B, T, 1): T*B scalars of layout fixup in the wrapper.
    return jnp.transpose(y_tb, (1, 0))[..., None]


def _reference_forward(x, h_0, c_0, w_ih, w_hh, b_ih, b_hh, w_fc, b_fc):
    """Pure-JAX reference (mirrors torch.nn.LSTM, PyTorch [i,f,g,o] order)."""
    B, T, E = x.shape
    H = w_hh.shape[1]
    h = h_0[0]
    c = c_0[0]
    outs = []
    for t in range(T):
        gates = x[:, t, :] @ w_ih.T + b_ih + h @ w_hh.T + b_hh
        i = jax.nn.sigmoid(gates[:, 0 * H:1 * H])
        f = jax.nn.sigmoid(gates[:, 1 * H:2 * H])
        g = jnp.tanh(gates[:, 2 * H:3 * H])
        o = jax.nn.sigmoid(gates[:, 3 * H:4 * H])
        c = f * c + i * g
        h = o * jnp.tanh(c)
        outs.append(h)
    hs = jnp.stack(outs, axis=1)                      # (B, T, H)
    return jax.nn.sigmoid(hs @ w_fc.T + b_fc)         # (B, T, 1)


if __name__ == "__main__":
    B, T, E, H = 2, 16, 16, 32

    key = jax.random.PRNGKey(0)
    kx, kh, kc, k_ih, k_hh, k_fc = jax.random.split(key, 6)

    # inputs
    x = jax.random.normal(kx, (B, T, E), dtype=jnp.float32)
    h_0 = jax.random.normal(kh, (1, B, H), dtype=jnp.float32)
    c_0 = jax.random.normal(kc, (1, B, H), dtype=jnp.float32)

    # parameters, matching LSTMNet.initparams(): U(-0.1, 0.1) weights, zero bias
    w_ih = jax.random.uniform(k_ih, (4 * H, E), jnp.float32, -0.1, 0.1)
    w_hh = jax.random.uniform(k_hh, (4 * H, H), jnp.float32, -0.1, 0.1)
    b_ih = jnp.zeros((4 * H,), jnp.float32)
    b_hh = jnp.zeros((4 * H,), jnp.float32)
    w_fc = jax.random.uniform(k_fc, (1, H), jnp.float32, -0.1, 0.1)
    b_fc = jnp.zeros((1,), jnp.float32)

    y = lstm_net_forward(x, h_0, c_0, w_ih, w_hh, b_ih, b_hh, w_fc, b_fc)
    y = jax.block_until_ready(y)

    y_ref = _reference_forward(x, h_0, c_0, w_ih, w_hh, b_ih, b_hh, w_fc, b_fc)
    np.testing.assert_allclose(np.asarray(y), np.asarray(y_ref),
                               rtol=2e-5, atol=2e-5)
    assert y.shape == (B, T, 1)

    print("KERNEL_OK")
</pallas_src>

<mosaic_0001>
module attributes {stable_mosaic.version = 11 : i64} {
  func.func @_lstm_chunk_kernel(%arg0: i32, %arg1: memref<8x2x128xf32, #tpu.memory_space<vmem>>, %arg2: memref<2x32xf32, #tpu.memory_space<vmem>>, %arg3: memref<2x32xf32, #tpu.memory_space<vmem>>, %arg4: memref<32x128xf32, #tpu.memory_space<vmem>>, %arg5: memref<1x32xf32, #tpu.memory_space<vmem>>, %arg6: memref<1xf32, #tpu.memory_space<smem>>, %arg7: memref<8x2xf32, #tpu.memory_space<vmem>>, %arg8: memref<2x32xf32, #tpu.memory_space<vmem>>, %arg9: memref<2x32xf32, #tpu.memory_space<vmem>>, %arg10: memref<8x2x32xf32, #tpu.memory_space<vmem>>) attributes {dimension_semantics = [#tpu.dimension_semantics<arbitrary>], iteration_bounds = array<i64: 2>, scalar_prefetch = 0 : i64, scratch_operands = 3 : i64, tpu.core_type = #tpu.core_type<tc>, window_params = [{transform_indices = @transform_0, window_bounds = array<i64: 8, 2, 128>}, {pipeline_mode = #tpu.pipeline_mode<synchronous>, transform_indices = @transform_1, window_bounds = array<i64: 2, 32>}, {pipeline_mode = #tpu.pipeline_mode<synchronous>, transform_indices = @transform_2, window_bounds = array<i64: 2, 32>}, {pipeline_mode = #tpu.pipeline_mode<synchronous>, transform_indices = @transform_3, window_bounds = array<i64: 32, 128>}, {pipeline_mode = #tpu.pipeline_mode<synchronous>, transform_indices = @transform_4, window_bounds = array<i64: 1, 32>}, {transform_indices = @transform_5, window_bounds = array<i64: 1>}, {transform_indices = @transform_6, window_bounds = array<i64: 8, 2>}]} {
    %c0_i32 = arith.constant 0 : i32
    %0 = arith.cmpi eq, %arg0, %c0_i32 : i32
    %1 = arith.extui %0 : i1 to i32
    %c0_i32_0 = arith.constant 0 : i32
    %2 = arith.cmpi ne, %1, %c0_i32_0 : i32
    scf.if %2 {
      %c0_68 = arith.constant 0 : index
      %c0_69 = arith.constant 0 : index
      %223 = vector.load %arg2[%c0_68, %c0_69] : memref<2x32xf32, #tpu.memory_space<vmem>>, vector<2x32xf32>
      %c0_70 = arith.constant 0 : index
      %c0_71 = arith.constant 0 : index
      %224 = vector.load %arg8[%c0_70, %c0_71] : memref<2x32xf32, #tpu.memory_space<vmem>>, vector<2x32xf32>
      tpu.vector_store %arg8[%c0_70, %c0_71], %223 {strides = array<i32>} : memref<2x32xf32, #tpu.memory_space<vmem>>, vector<2x32xf32>,
      %c0_72 = arith.constant 0 : index
      %c0_73 = arith.constant 0 : index
      %225 = vector.load %arg3[%c0_72, %c0_73] : memref<2x32xf32, #tpu.memory_space<vmem>>, vector<2x32xf32>
      %c0_74 = arith.constant 0 : index
      %c0_75 = arith.constant 0 : index
      %226 = vector.load %arg9[%c0_74, %c0_75] : memref<2x32xf32, #tpu.memory_space<vmem>>, vector<2x32xf32>
      tpu.vector_store %arg9[%c0_74, %c0_75], %225 {strides = array<i32>} : memref<2x32xf32, #tpu.memory_space<vmem>>, vector<2x32xf32>,
    } else {
    }
    %c0 = arith.constant 0 : index
    %c0_1 = arith.constant 0 : index
    %3 = vector.load %arg4[%c0, %c0_1] : memref<32x128xf32, #tpu.memory_space<vmem>>, vector<32x128xf32>
    %c0_2 = arith.constant 0 : index
    %c0_3 = arith.constant 0 : index
    %4 = vector.load %arg8[%c0_2, %c0_3] : memref<2x32xf32, #tpu.memory_space<vmem>>, vector<2x32xf32>
    %c0_4 = arith.constant 0 : index
    %c0_5 = arith.constant 0 : index
    %5 = vector.load %arg9[%c0_4, %c0_5] : memref<2x32xf32, #tpu.memory_space<vmem>>, vector<2x32xf32>
    %c0_i32_6 = arith.constant 0 : i32
    %6 = arith.index_cast %c0_i32_6 : i32 to index
    %c0_7 = arith.constant 0 : index
    %c0_8 = arith.constant 0 : index
    %7 = vector.load %arg1[%6, %c0_7, %c0_8] : memref<8x2x128xf32, #tpu.memory_space<vmem>>, vector<1x2x128xf32>
    %8 = vector.shape_cast %7 : vector<1x2x128xf32> to vector<2x128xf32>
    %cst = arith.constant dense<0.000000e+00> : vector<2x128xf32>
    %9 = tpu.matmul %4, %3, %cst {dimension_numbers = #tpu.dot_dimension_numbers<[1], [0], [0], [1], [0, 0, 1, 1], [], []>} : vector<2x32xf32>, vector<32x128xf32>, vector<2x128xf32> -> vector<2x128xf32>
    %10 = arith.addf %8, %9 : vector<2x128xf32>
    %11 = vector.extract_strided_slice %10 {offsets = [0, 0], sizes = [2, 96], strides = [1, 1]} : vector<2x128xf32> to vector<2x96xf32>
    %12 = arith.negf %11 : vector<2x96xf32>
    %13 = math.exp %12 : vector<2x96xf32>
    %cst_9 = arith.constant 1.000000e+00 : f32
    %14 = vector.broadcast %cst_9 : f32 to vector<2x96xf32>
    %15 = arith.addf %14, %13 : vector<2x96xf32>
    %16 = arith.divf %14, %15 : vector<2x96xf32>
    %17 = vector.extract_strided_slice %16 {offsets = [0, 0], sizes = [2, 32], strides = [1, 1]} : vector<2x96xf32> to vector<2x32xf32>
    %18 = vector.extract_strided_slice %16 {offsets = [0, 32], sizes = [2, 32], strides = [1, 1]} : vector<2x96xf32> to vector<2x32xf32>
    %19 = vector.extract_strided_slice %16 {offsets = [0, 64], sizes = [2, 32], strides = [1, 1]} : vector<2x96xf32> to vector<2x32xf32>
    %20 = vector.extract_strided_slice %10 {offsets = [0, 96], sizes = [2, 32], strides = [1, 1]} : vector<2x128xf32> to vector<2x32xf32>
    %21 = math.tanh %20 : vector<2x32xf32>
    %22 = arith.mulf %18, %5 : vector<2x32xf32>
    %23 = arith.mulf %17, %21 : vector<2x32xf32>
    %24 = arith.addf %22, %23 : vector<2x32xf32>
    %25 = math.tanh %24 : vector<2x32xf32>
    %26 = arith.mulf %19, %25 : vector<2x32xf32>
    %27 = arith.index_cast %c0_i32_6 : i32 to index
    %c0_10 = arith.constant 0 : index
    %c0_11 = arith.constant 0 : index
    %28 = vector.load %arg10[%27, %c0_10, %c0_11] : memref<8x2x32xf32, #tpu.memory_space<vmem>>, vector<1x2x32xf32>
    %29 = vector.shape_cast %28 : vector<1x2x32xf32> to vector<2x32xf32>
    %30 = vector.shape_cast %26 : vector<2x32xf32> to vector<1x2x32xf32>
    tpu.vector_store %arg10[%27, %c0_10, %c0_11], %30 {strides = array<i32>} : memref<8x2x32xf32, #tpu.memory_space<vmem>>, vector<1x2x32xf32>,
    %c1_i32 = arith.constant 1 : i32
    %31 = arith.index_cast %c1_i32 : i32 to index
    %c0_12 = arith.constant 0 : index
    %c0_13 = arith.constant 0 : index
    %32 = vector.load %arg1[%31, %c0_12, %c0_13] : memref<8x2x128xf32, #tpu.memory_space<vmem>>, vector<1x2x128xf32>
    %33 = vector.shape_cast %32 : vector<1x2x128xf32> to vector<2x128xf32>
    %cst_14 = arith.constant dense<0.000000e+00> : vector<2x128xf32>
    %34 = tpu.matmul %26, %3, %cst_14 {dimension_numbers = #tpu.dot_dimension_numbers<[1], [0], [0], [1], [0, 0, 1, 1], [], []>} : vector<2x32xf32>, vector<32x128xf32>, vector<2x128xf32> -> vector<2x128xf32>
    %35 = arith.addf %33, %34 : vector<2x128xf32>
    %36 = vector.extract_strided_slice %35 {offsets = [0, 0], sizes = [2, 96], strides = [1, 1]} : vector<2x128xf32> to vector<2x96xf32>
    %37 = arith.negf %36 : vector<2x96xf32>
    %38 = math.exp %37 : vector<2x96xf32>
    %cst_15 = arith.constant 1.000000e+00 : f32
    %39 = vector.broadcast %cst_15 : f32 to vector<2x96xf32>
    %40 = arith.addf %39, %38 : vector<2x96xf32>
    %41 = arith.divf %39, %40 : vector<2x96xf32>
    %42 = vector.extract_strided_slice %41 {offsets = [0, 0], sizes = [2, 32], strides = [1, 1]} : vector<2x96xf32> to vector<2x32xf32>
    %43 = vector.extract_strided_slice %41 {offsets = [0, 32], sizes = [2, 32], strides = [1, 1]} : vector<2x96xf32> to vector<2x32xf32>
    %44 = vector.extract_strided_slice %41 {offsets = [0, 64], sizes = [2, 32], strides = [1, 1]} : vector<2x96xf32> to vector<2x32xf32>
    %45 = vector.extract_strided_slice %35 {offsets = [0, 96], sizes = [2, 32], strides = [1, 1]} : vector<2x128xf32> to vector<2x32xf32>
    %46 = math.tanh %45 : vector<2x32xf32>
    %47 = arith.mulf %43, %24 : vector<2x32xf32>
    %48 = arith.mulf %42, %46 : vector<2x32xf32>
    %49 = arith.addf %47, %48 : vector<2x32xf32>
    %50 = math.tanh %49 : vector<2x32xf32>
    %51 = arith.mulf %44, %50 : vector<2x32xf32>
    %52 = arith.index_cast %c1_i32 : i32 to index
    %c0_16 = arith.constant 0 : index
    %c0_17 = arith.constant 0 : index
    %53 = vector.load %arg10[%52, %c0_16, %c0_17] : memref<8x2x32xf32, #tpu.memory_space<vmem>>, vector<1x2x32xf32>
    %54 = vector.shape_cast %53 : vector<1x2x32xf32> to vector<2x32xf32>
    %55 = vector.shape_cast %51 : vector<2x32xf32> to vector<1x2x32xf32>
    tpu.vector_store %arg10[%52, %c0_16, %c0_17], %55 {strides = array<i32>} : memref<8x2x32xf32, #tpu.memory_space<vmem>>, vector<1x2x32xf32>,
    %c2_i32 = arith.constant 2 : i32
    %56 = arith.index_cast %c2_i32 : i32 to index
    %c0_18 = arith.constant 0 : index
    %c0_19 = arith.constant 0 : index
    %57 = vector.load %arg1[%56, %c0_18, %c0_19] : memref<8x2x128xf32, #tpu.memory_space<vmem>>, vector<1x2x128xf32>
    %58 = vector.shape_cast %57 : vector<1x2x128xf32> to vector<2x128xf32>
    %cst_20 = arith.constant dense<0.000000e+00> : vector<2x128xf32>
    %59 = tpu.matmul %51, %3, %cst_20 {dimension_numbers = #tpu.dot_dimension_numbers<[1], [0], [0], [1], [0, 0, 1, 1], [], []>} : vector<2x32xf32>, vector<32x128xf32>, vector<2x128xf32> -> vector<2x128xf32>
    %60 = arith.addf %58, %59 : vector<2x128xf32>
    %61 = vector.extract_strided_slice %60 {offsets = [0, 0], sizes = [2, 96], strides = [1, 1]} : vector<2x128xf32> to vector<2x96xf32>
    %62 = arith.negf %61 : vector<2x96xf32>
    %63 = math.exp %62 : vector<2x96xf32>
    %cst_21 = arith.constant 1.000000e+00 : f32
    %64 = vector.broadcast %cst_21 : f32 to vector<2x96xf32>
    %65 = arith.addf %64, %63 : vector<2x96xf32>
    %66 = arith.divf %64, %65 : vector<2x96xf32>
    %67 = vector.extract_strided_slice %66 {offsets = [0, 0], sizes = [2, 32], strides = [1, 1]} : vector<2x96xf32> to vector<2x32xf32>
    %68 = vector.extract_strided_slice %66 {offsets = [0, 32], sizes = [2, 32], strides = [1, 1]} : vector<2x96xf32> to vector<2x32xf32>
    %69 = vector.extract_strided_slice %66 {offsets = [0, 64], sizes = [2, 32], strides = [1, 1]} : vector<2x96xf32> to vector<2x32xf32>
    %70 = vector.extract_strided_slice %60 {offsets = [0, 96], sizes = [2, 32], strides = [1, 1]} : vector<2x128xf32> to vector<2x32xf32>
    %71 = math.tanh %70 : vector<2x32xf32>
    %72 = arith.mulf %68, %49 : vector<2x32xf32>
    %73 = arith.mulf %67, %71 : vector<2x32xf32>
    %74 = arith.addf %72, %73 : vector<2x32xf32>
    %75 = math.tanh %74 : vector<2x32xf32>
    %76 = arith.mulf %69, %75 : vector<2x32xf32>
    %77 = arith.index_cast %c2_i32 : i32 to index
    %c0_22 = arith.constant 0 : index
    %c0_23 = arith.constant 0 : index
    %78 = vector.load %arg10[%77, %c0_22, %c0_23] : memref<8x2x32xf32, #tpu.memory_space<vmem>>, vector<1x2x32xf32>
    %79 = vector.shape_cast %78 : vector<1x2x32xf32> to vector<2x32xf32>
    %80 = vector.shape_cast %76 : vector<2x32xf32> to vector<1x2x32xf32>
    tpu.vector_store %arg10[%77, %c0_22, %c0_23], %80 {strides = array<i32>} : memref<8x2x32xf32, #tpu.memory_space<vmem>>, vector<1x2x32xf32>,
    %c3_i32 = arith.constant 3 : i32
    %81 = arith.index_cast %c3_i32 : i32 to index
    %c0_24 = arith.constant 0 : index
    %c0_25 = arith.constant 0 : index
    %82 = vector.load %arg1[%81, %c0_24, %c0_25] : memref<8x2x128xf32, #tpu.memory_space<vmem>>, vector<1x2x128xf32>
    %83 = vector.shape_cast %82 : vector<1x2x128xf32> to vector<2x128xf32>
    %cst_26 = arith.constant dense<0.000000e+00> : vector<2x128xf32>
    %84 = tpu.matmul %76, %3, %cst_26 {dimension_numbers = #tpu.dot_dimension_numbers<[1], [0], [0], [1], [0, 0, 1, 1], [], []>} : vector<2x32xf32>, vector<32x128xf32>, vector<2x128xf32> -> vector<2x128xf32>
    %85 = arith.addf %83, %84 : vector<2x128xf32>
    %86 = vector.extract_strided_slice %85 {offsets = [0, 0], sizes = [2, 96], strides = [1, 1]} : vector<2x128xf32> to vector<2x96xf32>
    %87 = arith.negf %86 : vector<2x96xf32>
    %88 = math.exp %87 : vector<2x96xf32>
    %cst_27 = arith.constant 1.000000e+00 : f32
    %89 = vector.broadcast %cst_27 : f32 to vector<2x96xf32>
    %90 = arith.addf %89, %88 : vector<2x96xf32>
    %91 = arith.divf %89, %90 : vector<2x96xf32>
    %92 = vector.extract_strided_slice %91 {offsets = [0, 0], sizes = [2, 32], strides = [1, 1]} : vector<2x96xf32> to vector<2x32xf32>
    %93 = vector.extract_strided_slice %91 {offsets = [0, 32], sizes = [2, 32], strides = [1, 1]} : vector<2x96xf32> to vector<2x32xf32>
    %94 = vector.extract_strided_slice %91 {offsets = [0, 64], sizes = [2, 32], strides = [1, 1]} : vector<2x96xf32> to vector<2x32xf32>
    %95 = vector.extract_strided_slice %85 {offsets = [0, 96], sizes = [2, 32], strides = [1, 1]} : vector<2x128xf32> to vector<2x32xf32>
    %96 = math.tanh %95 : vector<2x32xf32>
    %97 = arith.mulf %93, %74 : vector<2x32xf32>
    %98 = arith.mulf %92, %96 : vector<2x32xf32>
    %99 = arith.addf %97, %98 : vector<2x32xf32>
    %100 = math.tanh %99 : vector<2x32xf32>
    %101 = arith.mulf %94, %100 : vector<2x32xf32>
    %102 = arith.index_cast %c3_i32 : i32 to index
    %c0_28 = arith.constant 0 : index
    %c0_29 = arith.constant 0 : index
    %103 = vector.load %arg10[%102, %c0_28, %c0_29] : memref<8x2x32xf32, #tpu.memory_space<vmem>>, vector<1x2x32xf32>
    %104 = vector.shape_cast %103 : vector<1x2x32xf32> to vector<2x32xf32>
    %105 = vector.shape_cast %101 : vector<2x32xf32> to vector<1x2x32xf32>
    tpu.vector_store %arg10[%102, %c0_28, %c0_29], %105 {strides = array<i32>} : memref<8x2x32xf32, #tpu.memory_space<vmem>>, vector<1x2x32xf32>,
    %c4_i32 = arith.constant 4 : i32
    %106 = arith.index_cast %c4_i32 : i32 to index
    %c0_30 = arith.constant 0 : index
    %c0_31 = arith.constant 0 : index
    %107 = vector.load %arg1[%106, %c0_30, %c0_31] : memref<8x2x128xf32, #tpu.memory_space<vmem>>, vector<1x2x128xf32>
    %108 = vector.shape_cast %107 : vector<1x2x128xf32> to vector<2x128xf32>
    %cst_32 = arith.constant dense<0.000000e+00> : vector<2x128xf32>
    %109 = tpu.matmul %101, %3, %cst_32 {dimension_numbers = #tpu.dot_dimension_numbers<[1], [0], [0], [1], [0, 0, 1, 1], [], []>} : vector<2x32xf32>, vector<32x128xf32>, vector<2x128xf32> -> vector<2x128xf32>
    %110 = arith.addf %108, %109 : vector<2x128xf32>
    %111 = vector.extract_strided_slice %110 {offsets = [0, 0], sizes = [2, 96], strides = [1, 1]} : vector<2x128xf32> to vector<2x96xf32>
    %112 = arith.negf %111 : vector<2x96xf32>
    %113 = math.exp %112 : vector<2x96xf32>
    %cst_33 = arith.constant 1.000000e+00 : f32
    %114 = vector.broadcast %cst_33 : f32 to vector<2x96xf32>
    %115 = arith.addf %114, %113 : vector<2x96xf32>
    %116 = arith.divf %114, %115 : vector<2x96xf32>
    %117 = vector.extract_strided_slice %116 {offsets = [0, 0], sizes = [2, 32], strides = [1, 1]} : vector<2x96xf32> to vector<2x32xf32>
    %118 = vector.extract_strided_slice %116 {offsets = [0, 32], sizes = [2, 32], strides = [1, 1]} : vector<2x96xf32> to vector<2x32xf32>
    %119 = vector.extract_strided_slice %116 {offsets = [0, 64], sizes = [2, 32], strides = [1, 1]} : vector<2x96xf32> to vector<2x32xf32>
    %120 = vector.extract_strided_slice %110 {offsets = [0, 96], sizes = [2, 32], strides = [1, 1]} : vector<2x128xf32> to vector<2x32xf32>
    %121 = math.tanh %120 : vector<2x32xf32>
    %122 = arith.mulf %118, %99 : vector<2x32xf32>
    %123 = arith.mulf %117, %121 : vector<2x32xf32>
    %124 = arith.addf %122, %123 : vector<2x32xf32>
    %125 = math.tanh %124 : vector<2x32xf32>
    %126 = arith.mulf %119, %125 : vector<2x32xf32>
    %127 = arith.index_cast %c4_i32 : i32 to index
    %c0_34 = arith.constant 0 : index
    %c0_35 = arith.constant 0 : index
    %128 = vector.load %arg10[%127, %c0_34, %c0_35] : memref<8x2x32xf32, #tpu.memory_space<vmem>>, vector<1x2x32xf32>
    %129 = vector.shape_cast %128 : vector<1x2x32xf32> to vector<2x32xf32>
    %130 = vector.shape_cast %126 : vector<2x32xf32> to vector<1x2x32xf32>
    tpu.vector_store %arg10[%127, %c0_34, %c0_35], %130 {strides = array<i32>} : memref<8x2x32xf32, #tpu.memory_space<vmem>>, vector<1x2x32xf32>,
    %c5_i32 = arith.constant 5 : i32
    %131 = arith.index_cast %c5_i32 : i32 to index
    %c0_36 = arith.constant 0 : index
    %c0_37 = arith.constant 0 : index
    %132 = vector.load %arg1[%131, %c0_36, %c0_37] : memref<8x2x128xf32, #tpu.memory_space<vmem>>, vector<1x2x128xf32>
    %133 = vector.shape_cast %132 : vector<1x2x128xf32> to vector<2x128xf32>
    %cst_38 = arith.constant dense<0.000000e+00> : vector<2x128xf32>
    %134 = tpu.matmul %126, %3, %cst_38 {dimension_numbers = #tpu.dot_dimension_numbers<[1], [0], [0], [1], [0, 0, 1, 1], [], []>} : vector<2x32xf32>, vector<32x128xf32>, vector<2x128xf32> -> vector<2x128xf32>
    %135 = arith.addf %133, %134 : vector<2x128xf32>
    %136 = vector.extract_strided_slice %135 {offsets = [0, 0], sizes = [2, 96], strides = [1, 1]} : vector<2x128xf32> to vector<2x96xf32>
    %137 = arith.negf %136 : vector<2x96xf32>
    %138 = math.exp %137 : vector<2x96xf32>
    %cst_39 = arith.constant 1.000000e+00 : f32
    %139 = vector.broadcast %cst_39 : f32 to vector<2x96xf32>
    %140 = arith.addf %139, %138 : vector<2x96xf32>
    %141 = arith.divf %139, %140 : vector<2x96xf32>
    %142 = vector.extract_strided_slice %141 {offsets = [0, 0], sizes = [2, 32], strides = [1, 1]} : vector<2x96xf32> to vector<2x32xf32>
    %143 = vector.extract_strided_slice %141 {offsets = [0, 32], sizes = [2, 32], strides = [1, 1]} : vector<2x96xf32> to vector<2x32xf32>
    %144 = vector.extract_strided_slice %141 {offsets = [0, 64], sizes = [2, 32], strides = [1, 1]} : vector<2x96xf32> to vector<2x32xf32>
    %145 = vector.extract_strided_slice %135 {offsets = [0, 96], sizes = [2, 32], strides = [1, 1]} : vector<2x128xf32> to vector<2x32xf32>
    %146 = math.tanh %145 : vector<2x32xf32>
    %147 = arith.mulf %143, %124 : vector<2x32xf32>
    %148 = arith.mulf %142, %146 : vector<2x32xf32>
    %149 = arith.addf %147, %148 : vector<2x32xf32>
    %150 = math.tanh %149 : vector<2x32xf32>
    %151 = arith.mulf %144, %150 : vector<2x32xf32>
    %152 = arith.index_cast %c5_i32 : i32 to index
    %c0_40 = arith.constant 0 : index
    %c0_41 = arith.constant 0 : index
    %153 = vector.load %arg10[%152, %c0_40, %c0_41] : memref<8x2x32xf32, #tpu.memory_space<vmem>>, vector<1x2x32xf32>
    %154 = vector.shape_cast %153 : vector<1x2x32xf32> to vector<2x32xf32>
    %155 = vector.shape_cast %151 : vector<2x32xf32> to vector<1x2x32xf32>
    tpu.vector_store %arg10[%152, %c0_40, %c0_41], %155 {strides = array<i32>} : memref<8x2x32xf32, #tpu.memory_space<vmem>>, vector<1x2x32xf32>,
    %c6_i32 = arith.constant 6 : i32
    %156 = arith.index_cast %c6_i32 : i32 to index
    %c0_42 = arith.constant 0 : index
    %c0_43 = arith.constant 0 : index
    %157 = vector.load %arg1[%156, %c0_42, %c0_43] : memref<8x2x128xf32, #tpu.memory_space<vmem>>, vector<1x2x128xf32>
    %158 = vector.shape_cast %157 : vector<1x2x128xf32> to vector<2x128xf32>
    %cst_44 = arith.constant dense<0.000000e+00> : vector<2x128xf32>
    %159 = tpu.matmul %151, %3, %cst_44 {dimension_numbers = #tpu.dot_dimension_numbers<[1], [0], [0], [1], [0, 0, 1, 1], [], []>} : vector<2x32xf32>, vector<32x128xf32>, vector<2x128xf32> -> vector<2x128xf32>
    %160 = arith.addf %158, %159 : vector<2x128xf32>
    %161 = vector.extract_strided_slice %160 {offsets = [0, 0], sizes = [2, 96], strides = [1, 1]} : vector<2x128xf32> to vector<2x96xf32>
    %162 = arith.negf %161 : vector<2x96xf32>
    %163 = math.exp %162 : vector<2x96xf32>
    %cst_45 = arith.constant 1.000000e+00 : f32
    %164 = vector.broadcast %cst_45 : f32 to vector<2x96xf32>
    %165 = arith.addf %164, %163 : vector<2x96xf32>
    %166 = arith.divf %164, %165 : vector<2x96xf32>
    %167 = vector.extract_strided_slice %166 {offsets = [0, 0], sizes = [2, 32], strides = [1, 1]} : vector<2x96xf32> to vector<2x32xf32>
    %168 = vector.extract_strided_slice %166 {offsets = [0, 32], sizes = [2, 32], strides = [1, 1]} : vector<2x96xf32> to vector<2x32xf32>
    %169 = vector.extract_strided_slice %166 {offsets = [0, 64], sizes = [2, 32], strides = [1, 1]} : vector<2x96xf32> to vector<2x32xf32>
    %170 = vector.extract_strided_slice %160 {offsets = [0, 96], sizes = [2, 32], strides = [1, 1]} : vector<2x128xf32> to vector<2x32xf32>
    %171 = math.tanh %170 : vector<2x32xf32>
    %172 = arith.mulf %168, %149 : vector<2x32xf32>
    %173 = arith.mulf %167, %171 : vector<2x32xf32>
    %174 = arith.addf %172, %173 : vector<2x32xf32>
    %175 = math.tanh %174 : vector<2x32xf32>
    %176 = arith.mulf %169, %175 : vector<2x32xf32>
    %177 = arith.index_cast %c6_i32 : i32 to index
    %c0_46 = arith.constant 0 : index
    %c0_47 = arith.constant 0 : index
    %178 = vector.load %arg10[%177, %c0_46, %c0_47] : memref<8x2x32xf32, #tpu.memory_space<vmem>>, vector<1x2x32xf32>
    %179 = vector.shape_cast %178 : vector<1x2x32xf32> to vector<2x32xf32>
    %180 = vector.shape_cast %176 : vector<2x32xf32> to vector<1x2x32xf32>
    tpu.vector_store %arg10[%177, %c0_46, %c0_47], %180 {strides = array<i32>} : memref<8x2x32xf32, #tpu.memory_space<vmem>>, vector<1x2x32xf32>,
    %c7_i32 = arith.constant 7 : i32
    %181 = arith.index_cast %c7_i32 : i32 to index
    %c0_48 = arith.constant 0 : index
    %c0_49 = arith.constant 0 : index
    %182 = vector.load %arg1[%181, %c0_48, %c0_49] : memref<8x2x128xf32, #tpu.memory_space<vmem>>, vector<1x2x128xf32>
    %183 = vector.shape_cast %182 : vector<1x2x128xf32> to vector<2x128xf32>
    %cst_50 = arith.constant dense<0.000000e+00> : vector<2x128xf32>
    %184 = tpu.matmul %176, %3, %cst_50 {dimension_numbers = #tpu.dot_dimension_numbers<[1], [0], [0], [1], [0, 0, 1, 1], [], []>} : vector<2x32xf32>, vector<32x128xf32>, vector<2x128xf32> -> vector<2x128xf32>
    %185 = arith.addf %183, %184 : vector<2x128xf32>
    %186 = vector.extract_strided_slice %185 {offsets = [0, 0], sizes = [2, 96], strides = [1, 1]} : vector<2x128xf32> to vector<2x96xf32>
    %187 = arith.negf %186 : vector<2x96xf32>
    %188 = math.exp %187 : vector<2x96xf32>
    %cst_51 = arith.constant 1.000000e+00 : f32
    %189 = vector.broadcast %cst_51 : f32 to vector<2x96xf32>
    %190 = arith.addf %189, %188 : vector<2x96xf32>
    %191 = arith.divf %189, %190 : vector<2x96xf32>
    %192 = vector.extract_strided_slice %191 {offsets = [0, 0], sizes = [2, 32], strides = [1, 1]} : vector<2x96xf32> to vector<2x32xf32>
    %193 = vector.extract_strided_slice %191 {offsets = [0, 32], sizes = [2, 32], strides = [1, 1]} : vector<2x96xf32> to vector<2x32xf32>
    %194 = vector.extract_strided_slice %191 {offsets = [0, 64], sizes = [2, 32], strides = [1, 1]} : vector<2x96xf32> to vector<2x32xf32>
    %195 = vector.extract_strided_slice %185 {offsets = [0, 96], sizes = [2, 32], strides = [1, 1]} : vector<2x128xf32> to vector<2x32xf32>
    %196 = math.tanh %195 : vector<2x32xf32>
    %197 = arith.mulf %193, %174 : vector<2x32xf32>
    %198 = arith.mulf %192, %196 : vector<2x32xf32>
    %199 = arith.addf %197, %198 : vector<2x32xf32>
    %200 = math.tanh %199 : vector<2x32xf32>
    %201 = arith.mulf %194, %200 : vector<2x32xf32>
    %202 = arith.index_cast %c7_i32 : i32 to index
    %c0_52 = arith.constant 0 : index
    %c0_53 = arith.constant 0 : index
    %203 = vector.load %arg10[%202, %c0_52, %c0_53] : memref<8x2x32xf32, #tpu.memory_space<vmem>>, vector<1x2x32xf32>
    %204 = vector.shape_cast %203 : vector<1x2x32xf32> to vector<2x32xf32>
    %205 = vector.shape_cast %201 : vector<2x32xf32> to vector<1x2x32xf32>
    tpu.vector_store %arg10[%202, %c0_52, %c0_53], %205 {strides = array<i32>} : memref<8x2x32xf32, #tpu.memory_space<vmem>>, vector<1x2x32xf32>,
    %c8_i32 = arith.constant 8 : i32
    %c0_54 = arith.constant 0 : index
    %c0_55 = arith.constant 0 : index
    %206 = vector.load %arg8[%c0_54, %c0_55] : memref<2x32xf32, #tpu.memory_space<vmem>>, vector<2x32xf32>
    tpu.vector_store %arg8[%c0_54, %c0_55], %201 {strides = array<i32>} : memref<2x32xf32, #tpu.memory_space<vmem>>, vector<2x32xf32>,
    %c0_56 = arith.constant 0 : index
    %c0_57 = arith.constant 0 : index
    %207 = vector.load %arg9[%c0_56, %c0_57] : memref<2x32xf32, #tpu.memory_space<vmem>>, vector<2x32xf32>
    tpu.vector_store %arg9[%c0_56, %c0_57], %199 {strides = array<i32>} : memref<2x32xf32, #tpu.memory_space<vmem>>, vector<2x32xf32>,
    %c0_58 = arith.constant 0 : index
    %c0_59 = arith.constant 0 : index
    %c0_60 = arith.constant 0 : index
    %208 = vector.load %arg10[%c0_58, %c0_59, %c0_60] : memref<8x2x32xf32, #tpu.memory_space<vmem>>, vector<8x2x32xf32>
    %c0_61 = arith.constant 0 : index
    %c0_62 = arith.constant 0 : index
    %209 = vector.load %arg5[%c0_61, %c0_62] : memref<1x32xf32, #tpu.memory_space<vmem>>, vector<1x32xf32>
    %210 = vector.shape_cast %209 : vector<1x32xf32> to vector<1x1x32xf32>
    %211 = vector.broadcast %210 : vector<1x1x32xf32> to vector<8x2x32xf32>
    %212 = arith.mulf %208, %211 : vector<8x2x32xf32>
    %cst_63 = arith.constant dense<0.000000e+00> : vector<8x2xf32>
    %213 = vector.multi_reduction <add>, %212, %cst_63 [2] : vector<8x2x32xf32> to vector<8x2xf32>
    %c0_64 = arith.constant 0 : index
    %214 = memref.load %arg6[%c0_64] : memref<1xf32, #tpu.memory_space<smem>>
    %215 = vector.broadcast %214 : f32 to vector<8x2xf32>
    %216 = arith.addf %213, %215 : vector<8x2xf32>
    %217 = arith.negf %216 : vector<8x2xf32>
    %218 = math.exp %217 : vector<8x2xf32>
    %cst_65 = arith.constant 1.000000e+00 : f32
    %219 = vector.broadcast %cst_65 : f32 to vector<8x2xf32>
    %220 = arith.addf %219, %218 : vector<8x2xf32>
    %221 = arith.divf %219, %220 : vector<8x2xf32>
    %c0_66 = arith.constant 0 : index
    %c0_67 = arith.constant 0 : index
    %222 = vector.load %arg7[%c0_66, %c0_67] : memref<8x2xf32, #tpu.memory_space<vmem>>, vector<8x2xf32>
    tpu.vector_store %arg7[%c0_66, %c0_67], %221 {strides = array<i32>} : memref<8x2xf32, #tpu.memory_space<vmem>>, vector<8x2xf32>,
    return
  }
  func.func @transform_0(%arg0: i32) -> (i32, i32, i32) {
    %c0_i32 = arith.constant 0 : i32
    %c0_i32_0 = arith.constant 0 : i32
    %c0_i32_1 = arith.constant 0 : i32
    return %arg0, %c0_i32, %c0_i32_0 : i32, i32, i32
  }
  func.func @transform_1(%arg0: i32) -> (i32, i32) {
    %c0_i32 = arith.constant 0 : i32
    %c0_i32_0 = arith.constant 0 : i32
    %c0_i32_1 = arith.constant 0 : i32
    return %c0_i32, %c0_i32_0 : i32, i32
  }
  func.func @transform_2(%arg0: i32) -> (i32, i32) {
    %c0_i32 = arith.constant 0 : i32
    %c0_i32_0 = arith.constant 0 : i32
    %c0_i32_1 = arith.constant 0 : i32
    return %c0_i32, %c0_i32_0 : i32, i32
  }
  func.func @transform_3(%arg0: i32) -> (i32, i32) {
    %c0_i32 = arith.constant 0 : i32
    %c0_i32_0 = arith.constant 0 : i32
    %c0_i32_1 = arith.constant 0 : i32
    return %c0_i32, %c0_i32_0 : i32, i32
  }
  func.func @transform_4(%arg0: i32) -> (i32, i32) {
    %c0_i32 = arith.constant 0 : i32
    %c0_i32_0 = arith.constant 0 : i32
    %c0_i32_1 = arith.constant 0 : i32
    return %c0_i32, %c0_i32_0 : i32, i32
  }
  func.func @transform_5(%arg0: i32) -> i32 {
    %c0_i32 = arith.constant 0 : i32
    %c0_i32_0 = arith.constant 0 : i32
    return %c0_i32 : i32
  }
  func.func @transform_6(%arg0: i32) -> (i32, i32) {
    %c0_i32 = arith.constant 0 : i32
    %c0_i32_0 = arith.constant 0 : i32
    return %arg0, %c0_i32 : i32, i32
  }
}

</mosaic_0001>

<bundles_post_ra>
// kernel: lstm_net_forward.1
= control target key start
LH: loop header
LB: loop body
LE: loop exit
PB: predicated region body
PF: predicated region fallthrough
CT: control target
= control target key end

     0   :  { %s1667_s23 = smov 0   ;;  %s1875_s0 = inlined_call_operand.vmem [shape: f32[16,2,128], index: 0, kind: input, shape index: {}]   ;;  %s1876_s1 = inlined_call_operand.vmem [shape: f32[2,32], index: 1, kind: input, shape index: {}]   ;;  %s1877_s2 = inlined_call_operand.vmem [shape: f32[2,32], index: 2, kind: input, shape index: {}]   ;;  %s1878_s3 = inlined_call_operand.vmem [shape: f32[32,128], index: 3, kind: input, shape index: {}]   ;;  %s1879_s4 = inlined_call_operand.vmem [shape: f32[1,32], index: 4, kind: input, shape index: {}]   ;;  %s1880_s5 = inlined_call_operand.<no memory space> [shape: f32[1], index: 5, kind: input, shape index: {}]   ;;  %s1881_s6 = inlined_call_operand.vmem [shape: f32[16,2], index: 6, kind: output, shape index: {}]  }
   0x1   :  { %11 = sst [smem:[#allocation5]] %s1880_s5 }
   0x2 LB: > { %s1336_s24 = sadd.s32 4294967295, %s1622_s23   ;;  %p1340_p0 = scmp.ge.s32.totalorder %s1622_s23, 1  ;;  %s1622_s23 = sphi %s1667_s23, %s17_s23  }
   0x3   : > { %p214_p1 = scmp.lt.s32.totalorder %s1622_s23, 3 }
   0x5   : > { %p215_p2 = pnand %p1340_p0, %p214_p1 }
   0x6   : > { %s1341_s25 = sshll.u32 (!%p215_p2), %s1336_s24, 3  ;;  %p249_p3 = scmp.lt.s32.totalorder (!%p215_p2), %s1336_s24, 1 }
   0x7   : > { %218 = sbr.rel (%p215_p2) target bundleno = 5729 (0x1661), region = 44  ;;  %p244_p4 = scmp.lt.s32.totalorder (!%p215_p2), %s1341_s25, 15 }
   0x8   : > { %p1344_p5 = scmp.ne.s32.totalorder (!%p215_p2), %s1336_s24, 0 }
   0xc   : > { %s250_s26 = scalar_select %p249_p3, %s1336_s24, 1 }
   0xd   : > { %s1883_s25 = smov (!%p244_p4, %s1341_s25), 15  ;;  %256 = sbr.rel (%p1344_p5) target bundleno = 21 (0x15), region = 48 }
   0xe   : > { %s1343_s5 = sshll.u32 %s250_s26, 3  ;;  %s1342_s27 = sshll.u32 %s1883_s25, 1 }
   0xf   : > { %s1678_s30 = scalar_lea.vmem %s1881_s6, %s1343_s5  ;;  %s1683_s9 = scalar_lea.vmem %s1875_s0, %s1342_s27 }
  0x12   : > { %v257_v0 = vld [vmem:[%s1876_s1] sm:$0x3]  ;;  %vm258_vm0 = vcmask 254976  }
  0x13   : > { %v260_v1 = vld [vmem:[%s1877_s2] sm:$0x3]  ;;  %259 = vst.msk [vmem:[#allocation2] sm:$0x3] %vm258_vm0, %v257_v0 }
  0x14   : > { %261 = vst.msk [vmem:[#allocation3] sm:$0x3] %vm258_vm0, %v260_v1 }
  0x15 PF: > { %v1694_v2 = vld [vmem:[%s1878_s3 + $0x18] sm:$0xff]  ;;  %v1624_v3 = vmov 0.0   ;;  %v1700_v4 = vld [vmem:[%s1878_s3 + $0x10] sm:$0xff]  ;;  %vm1625_vm1 = vmmov 0   ;;  %v1710_v5 = vld [vmem:[%s1878_s3 + $0x8] sm:$0xff]  ;;  %vm269_vm2 = vcmask 261120  }
  0x16   : > { %1419 = vmatprep.subr.mxu0 %v1624_v3  ;;  %1427 = vmatprep.mubr.msk.f32.mxu0 %vm1625_vm1, %v1624_v3  ;;  %v1719_v6 = vld [vmem:[%s1878_s3] sm:$0xff]  ;;  %s1626_s22 = smov 32   ;;  %s1627_s24 = smov 64   ;;  %vm376_vm3 = vcmask 254976   ;;  %vm1266_vm4 = vcmask 1041409   ;;  %vm1268_vm5 = vcmask 1042434  }
  0x17   : > { %1420 = vmatpush3.msra.mxu0 %v1694_v2  ;;  %1430 = vmatprep.subr.mxu1 %v1624_v3  ;;  %v268_v8 = vld [vmem:[%s1683_s9] sm:$0x3]  ;;  %v1347_v28 = vld [vmem:[%s1683_s9 + $0x2] sm:$0x3]  ;;  %v1350_v46 = vld [vmem:[%s1683_s9 + $0x4] sm:$0x3] }
  0x18   : > { %1421 = vmatprep.subr.mxu0 %v1624_v3  ;;  %1431 = vmatpush3.msra.mxu1 %v1694_v2  ;;  %v1353_v0 = vld [vmem:[%s1683_s9 + $0x6] sm:$0x3]  ;;  %s1628_s5 = smov 96   ;;  %s1166_s27 = sld [smem:[#allocation5]]  ;;  %vm1270_vm6 = vcmask 1043459   ;;  %vm1272_vm7 = vcmask 1044484  }
  0x19   : > { %1422 = vmatpush3.msra.mxu0 %v1700_v4  ;;  %1432 = vmatprep.subr.mxu1 %v1624_v3  ;;  %vm1274_vm8 = vcmask 1045509   ;;  %vm1276_vm9 = vcmask 1046534   ;;  %vm1278_vm10 = vcmask 1047559   ;;  %vm1281_vm11 = vcmask 15360  }
  0x1a   : > { %1423 = vmatprep.subr.mxu0 %v1624_v3  ;;  %1433 = vmatpush3.msra.mxu1 %v1700_v4  ;;  %v266_v7 = vld [vmem:[#allocation2] sm:$0x3] }
  0x1b   : > { %1424 = vmatpush3.msra.mxu0 %v1710_v5  ;;  %1434 = vmatprep.subr.mxu1 %v1624_v3  ;;  %v267_v13 = vld [vmem:[#allocation3] sm:$0x3] }
  0x1c   : > { %1425 = vmatprep.subr.mxu0 %v1624_v3  ;;  %1435 = vmatpush3.msra.mxu1 %v1710_v5 }
  0x1d   : > { %1426 = vmatpush3.msra.mxu0 %v1719_v6  ;;  %1436 = vmatprep.subr.mxu1 %v1624_v3 }
  0x1e   : > { %1428 = vmatmul.mubr.msk.f32.vlgmr.msra.gmra.mxu0 %vm269_vm2, %v266_v7  ;;  %1437 = vmatpush3.msra.mxu1 %v1719_v6 }
  0x1f   : > { %1438 = vmatprep.mubr.msk.f32.mxu1 %vm1625_vm1, %v1624_v3  ;;  %1441 = vmatprep.subr.mxu0 %v1624_v3 }
  0x20   : > { %1442 = vmatpush3.msra.mxu0 %v1694_v2  ;;  %1449 = vmatprep.mubr.msk.f32.mxu0 %vm1625_vm1, %v1624_v3 }
  0x21   : > { %1443 = vmatprep.subr.mxu0 %v1624_v3  ;;  %1452 = vmatprep.subr.mxu1 %v1624_v3 }
  0x22   : > { %1444 = vmatpush3.msra.mxu0 %v1700_v4 }
  0x23   : > { %1445 = vmatprep.subr.mxu0 %v1624_v3 }
  0x24   : > { %1446 = vmatpush3.msra.mxu0 %v1710_v5 }
  0x25   : > { %1447 = vmatprep.subr.mxu0 %v1624_v3 }
  0x26   : > { %1448 = vmatpush3.msra.mxu0 %v1719_v6 }
  0x27   : > { %1463 = vmatprep.subr.mxu0 %v1624_v3 }
  0xde   : > { %v339_v9 = vpop.f32.mrf.mxu0 }
  0xdf   : > { %v343_v10 = vadd.f32 %v339_v9, %v268_v8 }
  0xe0   : > { %v1429_v11 = vpop.f32.mrf.mxu0 }
  0xe1   : > { %1520 = vtanh.f32 %v343_v10  ;;  %v1346_v14 = vmul.f32 -1.442695, %v343_v10 }
  0xe3   : > { %1522 = vpow2.f32 %v1346_v14 }
  0xee   : > { %v1521_v12 = vpop.eup %1520 }
  0xef   : > { %357 = vrot.lane.b32.xlu0 %v1521_v12, %s1626_s22 }
  0xf0   : > { %v1523_v15 = vpop.eup %1522 }
  0xf1   : > { %v347_v16 = vadd.f32 1.0, %v1523_v15 }
  0xf3   : > { %352 = vrot.lane.b32.xlu0 %v267_v13, %s1626_s22  ;;  %1524 = vrcp.f32 %v347_v16 }
 0x100   : > { %v1525_v17 = vpop.eup %1524 }
 0x161   : > { %v358_v18 = vpop.permute.xlu0 %357 }
 0x162   : > { %v360_v19 = vmul.f32 %v1525_v17, %v358_v18 }
 0x164   : > { %362 = vrot.lane.b32.xlu1 %v360_v19, %s1626_s22 }
 0x165   : > { %v353_v20 = vpop.permute.xlu0 %352 }
 0x166   : > { %v355_v21 = vmul.f32 %v1525_v17, %v353_v20 }
 0x1d6   : > { %v363_v22 = vpop.permute.xlu1 %362 }
 0x1d7   : > { %v365_v23 = vadd.f32 %v363_v22, %v355_v21 }
 0x1d9   : > { %1526 = vtanh.f32 %v365_v23 }
 0x1e6   : > { %v1527_v24 = vpop.eup %1526 }
 0x1e7   : > { %368 = vrot.lane.b32.xlu1 %v1527_v24, %s1626_s22 }
 0x259   : > { %v369_v25 = vpop.permute.xlu1 %368 }
 0x25a   : > { %v371_v26 = vmul.f32 %v1525_v17, %v369_v25 }
 0x25c   : > { %373 = vrot.lane.b32.xlu0 %v371_v26, %s1627_s24 }
 0x2ce   : > { %v374_v27 = vpop.permute.xlu0 %373 }
 0x2cf   : > { %377 = vst.msk [vmem:[#allocation4] sm:$0x3] %vm376_vm3, %v374_v27  ;;  %1439 = vmatmul.mubr.msk.f32.vlgmr.msra.gmra.mxu1 %vm269_vm2, %v374_v27 }
 0x2d0   : > { %1453 = vmatpush3.msra.mxu1 %v1694_v2  ;;  %1460 = vmatprep.mubr.msk.f32.mxu1 %vm1625_vm1, %v1624_v3 }
 0x2d1   : > { %1454 = vmatprep.subr.mxu1 %v1624_v3 }
 0x2d2   : > { %1455 = vmatpush3.msra.mxu1 %v1700_v4 }
 0x2d3   : > { %1456 = vmatprep.subr.mxu1 %v1624_v3 }
 0x2d4   : > { %1457 = vmatpush3.msra.mxu1 %v1710_v5 }
 0x2d5   : > { %1458 = vmatprep.subr.mxu1 %v1624_v3 }
 0x2d6   : > { %1459 = vmatpush3.msra.mxu1 %v1719_v6 }
 0x2d7   : > { %1474 = vmatprep.subr.mxu1 %v1624_v3 }
 0x38f   : > { %v448_v29 = vpop.f32.mrf.mxu1 }
 0x390   : > { %v452_v30 = vadd.f32 %v1347_v28, %v448_v29 }
 0x391   : > { %v1440_v31 = vpop.f32.mrf.mxu1 }
 0x392   : > { %1528 = vtanh.f32 %v452_v30  ;;  %v1349_v33 = vmul.f32 -1.442695, %v452_v30 }
 0x394   : > { %1530 = vpow2.f32 %v1349_v33 }
 0x39f   : > { %v1529_v32 = vpop.eup %1528 }
 0x3a0   : > { %462 = vrot.lane.b32.xlu1 %v1529_v32, %s1626_s22 }
 0x3a1   : > { %v1531_v34 = vpop.eup %1530 }
 0x3a2   : > { %v456_v35 = vadd.f32 1.0, %v1531_v34 }
 0x3a4   : > { %1532 = vrcp.f32 %v456_v35 }
 0x3b1   : > { %v1533_v36 = vpop.eup %1532 }
 0x3b2   : > { %v460_v39 = vmul.f32 %v1533_v36, %v365_v23  ;;  %v1356_v23 = vld [vmem:[%s1683_s9 + $0x8] sm:$0x3] }
 0x412   : > { %v463_v37 = vpop.permute.xlu1 %462 }
 0x413   : > { %v465_v38 = vmul.f32 %v1533_v36, %v463_v37 }
 0x415   : > { %467 = vrot.lane.b32.xlu0 %v465_v38, %s1626_s22 }
 0x487   : > { %v468_v40 = vpop.permute.xlu0 %467 }
 0x488   : > { %v470_v41 = vadd.f32 %v468_v40, %v460_v39 }
 0x48a   : > { %1534 = vtanh.f32 %v470_v41 }
 0x497   : > { %v1535_v42 = vpop.eup %1534 }
 0x498   : > { %473 = vrot.lane.b32.xlu1 %v1535_v42, %s1626_s22 }
 0x50a   : > { %v474_v43 = vpop.permute.xlu1 %473 }
 0x50b   : > { %v476_v44 = vmul.f32 %v1533_v36, %v474_v43 }
 0x50d   : > { %478 = vrot.lane.b32.xlu0 %v476_v44, %s1627_s24 }
 0x57f   : > { %v479_v45 = vpop.permute.xlu0 %478 }
 0x580   : > { %482 = vst.msk [vmem:[#allocation4 + $0x2] sm:$0x3] %vm376_vm3, %v479_v45  ;;  %1450 = vmatmul.mubr.msk.f32.vlgmr.msra.gmra.mxu0 %vm269_vm2, %v479_v45 }
 0x581   : > { %1464 = vmatpush3.msra.mxu0 %v1694_v2  ;;  %1471 = vmatprep.mubr.msk.f32.mxu0 %vm1625_vm1, %v1624_v3 }
 0x582   : > { %1465 = vmatprep.subr.mxu0 %v1624_v3 }
 0x583   : > { %1466 = vmatpush3.msra.mxu0 %v1700_v4 }
 0x584   : > { %1467 = vmatprep.subr.mxu0 %v1624_v3 }
 0x585   : > { %1468 = vmatpush3.msra.mxu0 %v1710_v5 }
 0x586   : > { %1469 = vmatprep.subr.mxu0 %v1624_v3 }
 0x587   : > { %1470 = vmatpush3.msra.mxu0 %v1719_v6 }
 0x588   : > { %1485 = vmatprep.subr.mxu0 %v1624_v3 }
 0x640   : > { %v553_v47 = vpop.f32.mrf.mxu0 }
 0x641   : > { %v557_v48 = vadd.f32 %v1350_v46, %v553_v47 }
 0x642   : > { %v1451_v49 = vpop.f32.mrf.mxu0 }
 0x643   : > { %1536 = vtanh.f32 %v557_v48  ;;  %v1352_v51 = vmul.f32 -1.442695, %v557_v48 }
 0x645   : > { %1538 = vpow2.f32 %v1352_v51 }
 0x650   : > { %v1537_v50 = vpop.eup %1536 }
 0x651   : > { %567 = vrot.lane.b32.xlu1 %v1537_v50, %s1626_s22 }
 0x652   : > { %v1539_v52 = vpop.eup %1538 }
 0x653   : > { %v561_v53 = vadd.f32 1.0, %v1539_v52 }
 0x655   : > { %1540 = vrcp.f32 %v561_v53 }
 0x662   : > { %v1541_v54 = vpop.eup %1540 }
 0x663   : > { %v565_v57 = vmul.f32 %v1541_v54, %v470_v41  ;;  %v1359_v41 = vld [vmem:[%s1683_s9 + $0xa] sm:$0x3] }
 0x6c3   : > { %v568_v55 = vpop.permute.xlu1 %567 }
 0x6c4   : > { %v570_v56 = vmul.f32 %v1541_v54, %v568_v55 }
 0x6c6   : > { %572 = vrot.lane.b32.xlu0 %v570_v56, %s1626_s22 }
 0x738   : > { %v573_v58 = vpop.permute.xlu0 %572 }
 0x739   : > { %v575_v59 = vadd.f32 %v573_v58, %v565_v57 }
 0x73b   : > { %1542 = vtanh.f32 %v575_v59 }
 0x748   : > { %v1543_v60 = vpop.eup %1542 }
 0x749   : > { %578 = vrot.lane.b32.xlu1 %v1543_v60, %s1626_s22 }
 0x7bb   : > { %v579_v61 = vpop.permute.xlu1 %578 }
 0x7bc   : > { %v581_v62 = vmul.f32 %v1541_v54, %v579_v61  ;;  %v1362_v54 = vld [vmem:[%s1683_s9 + $0xc] sm:$0x3] }
 0x7be   : > { %583 = vrot.lane.b32.xlu0 %v581_v62, %s1627_s24 }
 0x830   : > { %v584_v63 = vpop.permute.xlu0 %583 }
 0x831   : > { %587 = vst.msk [vmem:[#allocation4 + $0x4] sm:$0x3] %vm376_vm3, %v584_v63  ;;  %1461 = vmatmul.mubr.msk.f32.vlgmr.msra.gmra.mxu1 %vm269_vm2, %v584_v63 }
 0x832   : > { %1475 = vmatpush3.msra.mxu1 %v1694_v2  ;;  %1482 = vmatprep.mubr.msk.f32.mxu1 %vm1625_vm1, %v1624_v3 }
 0x833   : > { %1476 = vmatprep.subr.mxu1 %v1624_v3 }
 0x834   : > { %1477 = vmatpush3.msra.mxu1 %v1700_v4 }
 0x835   : > { %1478 = vmatprep.subr.mxu1 %v1624_v3 }
 0x836   : > { %1479 = vmatpush3.msra.mxu1 %v1710_v5 }
 0x837   : > { %1480 = vmatprep.subr.mxu1 %v1624_v3 }
 0x838   : > { %1481 = vmatpush3.msra.mxu1 %v1719_v6 }
 0x839   : > { %1496 = vmatprep.subr.mxu1 %v1624_v3 }
 0x8f1   : > { %v658_v1 = vpop.f32.mrf.mxu1 }
 0x8f2   : > { %v662_v7 = vadd.f32 %v1353_v0, %v658_v1 }
 0x8f3   : > { %v1462_v8 = vpop.f32.mrf.mxu1 }
 0x8f4   : > { %1544 = vtanh.f32 %v662_v7  ;;  %v1355_v10 = vmul.f32 -1.442695, %v662_v7 }
 0x8f6   : > { %1546 = vpow2.f32 %v1355_v10 }
 0x901   : > { %v1545_v9 = vpop.eup %1544 }
 0x902   : > { %672 = vrot.lane.b32.xlu1 %v1545_v9, %s1626_s22 }
 0x903   : > { %v1547_v11 = vpop.eup %1546 }
 0x904   : > { %v666_v12 = vadd.f32 1.0, %v1547_v11 }
 0x906   : > { %1548 = vrcp.f32 %v666_v12 }
 0x913   : > { %v1549_v13 = vpop.eup %1548 }
 0x914   : > { %v670_v16 = vmul.f32 %v1549_v13, %v575_v59 }
 0x974   : > { %v673_v14 = vpop.permute.xlu1 %672 }
 0x975   : > { %v675_v15 = vmul.f32 %v1549_v13, %v673_v14 }
 0x977   : > { %677 = vrot.lane.b32.xlu0 %v675_v15, %s1626_s22 }
 0x9e9   : > { %v678_v17 = vpop.permute.xlu0 %677 }
 0x9ea   : > { %v680_v18 = vadd.f32 %v678_v17, %v670_v16 }
 0x9ec   : > { %1550 = vtanh.f32 %v680_v18 }
 0x9f9   : > { %v1551_v19 = vpop.eup %1550 }
 0x9fa   : > { %683 = vrot.lane.b32.xlu1 %v1551_v19, %s1626_s22 }
 0xa6c   : > { %v684_v20 = vpop.permute.xlu1 %683 }
 0xa6d   : > { %v686_v21 = vmul.f32 %v1549_v13, %v684_v20  ;;  %v1365_v13 = vld [vmem:[%s1683_s9 + $0xe] sm:$0x3] }
 0xa6f   : > { %688 = vrot.lane.b32.xlu0 %v686_v21, %s1627_s24 }
 0xae1   : > { %v689_v22 = vpop.permute.xlu0 %688 }
 0xae2   : > { %692 = vst.msk [vmem:[#allocation4 + $0x6] sm:$0x3] %vm376_vm3, %v689_v22  ;;  %1472 = vmatmul.mubr.msk.f32.vlgmr.msra.gmra.mxu0 %vm269_vm2, %v689_v22 }
 0xae3   : > { %1486 = vmatpush3.msra.mxu0 %v1694_v2  ;;  %1493 = vmatprep.mubr.msk.f32.mxu0 %vm1625_vm1, %v1624_v3 }
 0xae4   : > { %1487 = vmatprep.subr.mxu0 %v1624_v3 }
 0xae5   : > { %1488 = vmatpush3.msra.mxu0 %v1700_v4 }
 0xae6   : > { %1489 = vmatprep.subr.mxu0 %v1624_v3 }
 0xae7   : > { %1490 = vmatpush3.msra.mxu0 %v1710_v5 }
 0xae8   : > { %1491 = vmatprep.subr.mxu0 %v1624_v3 }
 0xae9   : > { %1492 = vmatpush3.msra.mxu0 %v1719_v6 }
 0xba2   : > { %v763_v24 = vpop.f32.mrf.mxu0 }
 0xba3   : > { %v767_v25 = vadd.f32 %v1356_v23, %v763_v24 }
 0xba4   : > { %v1473_v26 = vpop.f32.mrf.mxu0 }
 0xba5   : > { %1552 = vtanh.f32 %v767_v25  ;;  %v1358_v28 = vmul.f32 -1.442695, %v767_v25 }
 0xba7   : > { %1554 = vpow2.f32 %v1358_v28  ;;  %v1119_v28 = vld [vmem:[#allocation4] sm:$0x3] }
 0xbb2   : > { %v1553_v27 = vpop.eup %1552 }
 0xbb3   : > { %777 = vrot.lane.b32.xlu1 %v1553_v27, %s1626_s22 }
 0xbb4   : > { %v1555_v29 = vpop.eup %1554 }
 0xbb5   : > { %v771_v30 = vadd.f32 1.0, %v1555_v29  ;;  %v1368_v29 = vld [vmem:[%s1879_s4] ss:$0 sm:$0xff] }
 0xbb7   : > { %1556 = vrcp.f32 %v771_v30  ;;  %v1134_v30 = vmul.f32 %v1368_v29, %v1119_v28 }
 0xbc4   : > { %v1557_v31 = vpop.eup %1556 }
 0xbc5   : > { %v775_v34 = vmul.f32 %v1557_v31, %v680_v18 }
 0xc25   : > { %v778_v32 = vpop.permute.xlu1 %777 }
 0xc26   : > { %v780_v33 = vmul.f32 %v1557_v31, %v778_v32  ;;  %v1142_v32 = vsel %vm376_vm3, %v1134_v30, 0.0 }
 0xc28   : > { %782 = vrot.lane.b32.xlu0 %v780_v33, %s1626_s22 }
 0xc9a   : > { %v783_v35 = vpop.permute.xlu0 %782 }
 0xc9b   : > { %v785_v36 = vadd.f32 %v783_v35, %v775_v34 }
 0xc9d   : > { %1558 = vtanh.f32 %v785_v36 }
 0xcaa   : > { %v1559_v37 = vpop.eup %1558 }
 0xcab   : > { %788 = vrot.lane.b32.xlu1 %v1559_v37, %s1626_s22 }
 0xd1d   : > { %v789_v38 = vpop.permute.xlu1 %788 }
 0xd1e   : > { %v791_v39 = vmul.f32 %v1557_v31, %v789_v38  ;;  %v1122_v31 = vld [vmem:[#allocation4 + $0x6] sm:$0x3] }
 0xd1f   : > { %v1137_v33 = vmul.f32 %v1368_v29, %v1122_v31 }
 0xd20   : > { %793 = vrot.lane.b32.xlu0 %v791_v39, %s1627_s24 }
 0xd21   : > { %v1151_v35 = vsel %vm376_vm3, %v1137_v33, 0.0 }
 0xd92   : > { %v794_v40 = vpop.permute.xlu0 %793 }
 0xd93   : > { %797 = vst.msk [vmem:[#allocation4 + $0x8] sm:$0x3] %vm376_vm3, %v794_v40  ;;  %1483 = vmatmul.mubr.msk.f32.vlgmr.msra.gmra.mxu1 %vm269_vm2, %v794_v40  ;;  %v1120_v40 = vld [vmem:[#allocation4 + $0x2] sm:$0x3] }
 0xd94   : > { %1497 = vmatpush3.msra.mxu1 %v1694_v2  ;;  %1504 = vmatprep.mubr.msk.f32.mxu1 %vm1625_vm1, %v1624_v3 }
 0xd95   : > { %1498 = vmatprep.subr.mxu1 %v1624_v3 }
 0xd96   : > { %1499 = vmatpush3.msra.mxu1 %v1700_v4 }
 0xd97   : > { %1500 = vmatprep.subr.mxu1 %v1624_v3 }
 0xd98   : > { %1501 = vmatpush3.msra.mxu1 %v1710_v5 }
 0xd99   : > { %1502 = vmatprep.subr.mxu1 %v1624_v3 }
 0xd9a   : > { %1503 = vmatpush3.msra.mxu1 %v1719_v6 }
 0xe53   : > { %v868_v42 = vpop.f32.mrf.mxu1 }
 0xe54   : > { %v872_v43 = vadd.f32 %v1359_v41, %v868_v42  ;;  %v1135_v41 = vmul.f32 %v1368_v29, %v1120_v40  ;;  %v1121_v42 = vld [vmem:[#allocation4 + $0x4] sm:$0x3] }
 0xe55   : > { %v1484_v44 = vpop.f32.mrf.mxu1 }
 0xe56   : > { %1560 = vtanh.f32 %v872_v43  ;;  %v1361_v45 = vmul.f32 -1.442695, %v872_v43  ;;  %v1145_v43 = vsel %vm376_vm3, %v1135_v41, 0.0  ;;  %v1136_v44 = vmul.f32 %v1368_v29, %v1121_v42 }
 0xe58   : > { %1562 = vpow2.f32 %v1361_v45  ;;  %v1148_v45 = vsel %vm376_vm3, %v1136_v44, 0.0 }
 0xe63   : > { %v1561_v2 = vpop.eup %1560 }
 0xe64   : > { %882 = vrot.lane.b32.xlu1 %v1561_v2, %s1626_s22  ;;  %v1123_v2 = vld [vmem:[#allocation4 + $0x8] sm:$0x3] }
 0xe65   : > { %v1563_v46 = vpop.eup %1562 }
 0xe66   : > { %v876_v4 = vadd.f32 1.0, %v1563_v46  ;;  %v1138_v46 = vmul.f32 %v1368_v29, %v1123_v2 }
 0xe68   : > { %1564 = vrcp.f32 %v876_v4 }
 0xe75   : > { %v1565_v47 = vpop.eup %1564 }
 0xe76   : > { %v880_v3 = vmul.f32 %v1565_v47, %v785_v36 }
 0xed6   : > { %v883_v5 = vpop.permute.xlu1 %882 }
 0xed7   : > { %v885_v48 = vmul.f32 %v1565_v47, %v883_v5 }
 0xed9   : > { %887 = vrot.lane.b32.xlu0 %v885_v48, %s1626_s22 }
 0xf4b   : > { %v888_v6 = vpop.permute.xlu0 %887 }
 0xf4c   : > { %v890_v49 = vadd.f32 %v888_v6, %v880_v3 }
 0xf4e   : > { %1566 = vtanh.f32 %v890_v49 }
 0xf5b   : > { %v1567_v50 = vpop.eup %1566 }
 0xf5c   : > { %893 = vrot.lane.b32.xlu1 %v1567_v50, %s1626_s22 }
 0xfce   : > { %v894_v51 = vpop.permute.xlu1 %893 }
 0xfcf   : > { %v896_v52 = vmul.f32 %v1565_v47, %v894_v51  ;;  %v1154_v47 = vsel %vm376_vm3, %v1138_v46, 0.0 }
 0xfd1   : > { %898 = vrot.lane.b32.xlu0 %v896_v52, %s1627_s24  ;;  %v1860_v52 = vstv %s1166_s27 }
0x1043   : > { %v899_v53 = vpop.permute.xlu0 %898 }
0x1044   : > { %902 = vst.msk [vmem:[#allocation4 + $0xa] sm:$0x3] %vm376_vm3, %v899_v53  ;;  %1494 = vmatmul.mubr.msk.f32.vlgmr.msra.gmra.mxu0 %vm269_vm2, %v899_v53 }
0x104b   : > { %v1124_v34 = vld [vmem:[#allocation4 + $0xa] sm:$0x3] }
0x104c   : > { %v1139_v36 = vmul.f32 %v1368_v29, %v1124_v34 }
0x104e   : > { %v1157_v37 = vsel %vm376_vm3, %v1139_v36, 0.0 }
0x1104   : > { %v973_v55 = vpop.f32.mrf.mxu0 }
0x1105   : > { %v977_v56 = vadd.f32 %v1362_v54, %v973_v55 }
0x1106   : > { %v1495_v57 = vpop.f32.mrf.mxu0 }
0x1107   : > { %1568 = vtanh.f32 %v977_v56  ;;  %v1364_v59 = vmul.f32 -1.442695, %v977_v56 }
0x1109   : > { %1570 = vpow2.f32 %v1364_v59 }
0x1114   : > { %v1569_v58 = vpop.eup %1568 }
0x1115   : > { %987 = vrot.lane.b32.xlu1 %v1569_v58, %s1626_s22 }
0x1116   : > { %v1571_v60 = vpop.eup %1570 }
0x1117   : > { %v981_v61 = vadd.f32 1.0, %v1571_v60 }
0x1119   : > { %1572 = vrcp.f32 %v981_v61 }
0x1126   : > { %v1573_v62 = vpop.eup %1572 }
0x1127   : > { %v985_v1 = vmul.f32 %v1573_v62, %v890_v49 }
0x1187   : > { %v988_v63 = vpop.permute.xlu1 %987 }
0x1188   : > { %v990_v0 = vmul.f32 %v1573_v62, %v988_v63 }
0x118a   : > { %992 = vrot.lane.b32.xlu0 %v990_v0, %s1626_s22 }
0x11fc   : > { %v993_v7 = vpop.permute.xlu0 %992 }
0x11fd   : > { %v995_v8 = vadd.f32 %v993_v7, %v985_v1 }
0x11ff   : > { %1574 = vtanh.f32 %v995_v8 }
0x120c   : > { %v1575_v9 = vpop.eup %1574 }
0x120d   : > { %998 = vrot.lane.b32.xlu1 %v1575_v9, %s1626_s22 }
0x127f   : > { %v999_v10 = vpop.permute.xlu1 %998 }
0x1280   : > { %v1001_v11 = vmul.f32 %v1573_v62, %v999_v10 }
0x1282   : > { %1003 = vrot.lane.b32.xlu0 %v1001_v11, %s1627_s24 }
0x12f4   : > { %v1004_v12 = vpop.permute.xlu0 %1003 }
0x12f5   : > { %1007 = vst.msk [vmem:[#allocation4 + $0xc] sm:$0x3] %vm376_vm3, %v1004_v12  ;;  %1505 = vmatmul.mubr.msk.f32.vlgmr.msra.gmra.mxu1 %vm269_vm2, %v1004_v12 }
0x12fc   : > { %v1125_v4 = vld [vmem:[#allocation4 + $0xc] sm:$0x3] }
0x12fd   : > { %v1140_v5 = vmul.f32 %v1368_v29, %v1125_v4 }
0x12ff   : > { %v1160_v48 = vsel %vm376_vm3, %v1140_v5, 0.0 }
0x13b5   : > { %v1078_v14 = vpop.f32.mrf.mxu1 }
0x13b6   : > { %v1082_v15 = vadd.f32 %v1365_v13, %v1078_v14 }
0x13b7   : > { %v1506_v16 = vpop.f32.mrf.mxu1 }
0x13b8   : > { %1576 = vtanh.f32 %v1082_v15  ;;  %v1367_v18 = vmul.f32 -1.442695, %v1082_v15 }
0x13ba   : > { %1578 = vpow2.f32 %v1367_v18 }
0x13c5   : > { %v1577_v17 = vpop.eup %1576 }
0x13c6   : > { %1092 = vrot.lane.b32.xlu1 %v1577_v17, %s1626_s22 }
0x13c7   : > { %v1579_v19 = vpop.eup %1578 }
0x13c8   : > { %v1086_v20 = vadd.f32 1.0, %v1579_v19 }
0x13ca   : > { %1580 = vrcp.f32 %v1086_v20 }
0x13d7   : > { %v1581_v21 = vpop.eup %1580 }
0x13d8   : > { %v1090_v24 = vmul.f32 %v1581_v21, %v995_v8 }
0x1438   : > { %v1093_v22 = vpop.permute.xlu1 %1092 }
0x1439   : > { %v1095_v23 = vmul.f32 %v1581_v21, %v1093_v22 }
0x143b   : > { %1097 = vrot.lane.b32.xlu0 %v1095_v23, %s1626_s22 }
0x14ad   : > { %v1098_v25 = vpop.permute.xlu0 %1097 }
0x14ae   : > { %v1100_v26 = vadd.f32 %v1098_v25, %v1090_v24  ;;  %v1232_v25 = vlaneseq }
0x14b0   : > { %1582 = vtanh.f32 %v1100_v26  ;;  %v1235_v30 = vshrl.u32 %v1232_v25, 7 }
0x14bd   : > { %v1583_v27 = vpop.eup %1582 }
0x14be   : > { %1103 = vrot.lane.b32.xlu1 %v1583_v27, %s1626_s22 }
0x14e2   : > { %1143 = vadd.xlane.f32.xlu1 %v1142_v32 }
0x14e6   : > { %1152 = vadd.xlane.f32.xlu1 %v1151_v35 }
0x14ea   : > { %1158 = vadd.xlane.f32.xlu1 %v1157_v37 }
0x1530   : > { %v1104_v38 = vpop.permute.xlu1 %1103 }
0x1531   : > { %v1106_v39 = vmul.f32 %v1581_v21, %v1104_v38 }
0x1533   : > { %1108 = vrot.lane.b32.xlu0 %v1106_v39, %s1627_s24 }
0x1552   : > { %1146 = vadd.xlane.f32.xlu0 %v1145_v43 }
0x1556   : > { %1149 = vadd.xlane.f32.xlu0 %v1148_v45 }
0x155a   : > { %1155 = vadd.xlane.f32.xlu0 %v1154_v47 }
0x155e   : > { %1161 = vadd.xlane.f32.xlu0 %v1160_v48 }
0x156b   : > { %v1144_v51 = vpop.xlane.xlu1 %1143 }
0x156c   : > { %v1168_v54 = vadd.f32 %v1860_v52, %v1144_v51 }
0x156e   : > { %v1369_v55 = vmul.f32 -1.442695, %v1168_v54 }
0x156f   : > { %v1153_v53 = vpop.xlane.xlu1 %1152 }
0x1570   : > { %v1171_v56 = vadd.f32 %v1860_v52, %v1153_v53  ;;  %1584 = vpow2.f32 %v1369_v55 }
0x1572   : > { %v1372_v60 = vmul.f32 -1.442695, %v1171_v56 }
0x1573   : > { %v1159_v57 = vpop.xlane.xlu1 %1158 }
0x1574   : > { %1115 = vrot.lane.b32.xlu0 %v1100_v26, %s1628_s5  ;;  %v1173_v61 = vadd.f32 %v1860_v52, %v1159_v57 }
0x1576   : > { %v1374_v1 = vmul.f32 -1.442695, %v1173_v61 }
0x157d   : > { %v1585_v13 = vpop.eup %1584 }
0x157e   : > { %v1200_v17 = vadd.f32 1.0, %v1585_v13 }
0x15a5   : > { %v1109_v3 = vpop.permute.xlu0 %1108 }
0x15a6   : > { %1112 = vst.msk [vmem:[#allocation4 + $0xe] sm:$0x3] %vm376_vm3, %v1109_v3  ;;  %1113 = vst.msk [vmem:[#allocation2] sm:$0x3] %vm376_vm3, %v1109_v3 }
0x15ad   : > { %v1126_v6 = vld [vmem:[#allocation4 + $0xe] sm:$0x3] }
0x15ae   : > { %v1141_v49 = vmul.f32 %v1368_v29, %v1126_v6  ;;  %v1233_v29 = vand.u32 127, %v1232_v25 }
0x15b0   : > { %v1163_v50 = vsel %vm376_vm3, %v1141_v49, 0.0  ;;  %v1236_v33 = vsub.s32 %v1233_v29, %v1235_v30 }
0x15b1   : > { %1164 = vadd.xlane.f32.xlu1 %v1163_v50 }
0x15db   : > { %v1147_v58 = vpop.xlane.xlu0 %1146 }
0x15dc   : > { %v1169_v59 = vadd.f32 %v1860_v52, %v1147_v58 }
0x15de   : > { %v1370_v62 = vmul.f32 -1.442695, %v1169_v59 }
0x15df   : > { %v1150_v63 = vpop.xlane.xlu0 %1149 }
0x15e0   : > { %1586 = vpow2.f32 %v1370_v62  ;;  %v1170_v0 = vadd.f32 %v1860_v52, %v1150_v63 }
0x15e1   : > { %1588 = vpow2.f32 %v1372_v60 }
0x15e2   : > { %v1371_v7 = vmul.f32 -1.442695, %v1170_v0 }
0x15e3   : > { %v1156_v8 = vpop.xlane.xlu0 %1155 }
0x15e4   : > { %1590 = vpow2.f32 %v1371_v7  ;;  %v1172_v9 = vadd.f32 %v1860_v52, %v1156_v8 }
0x15e5   : > { %1592 = vpow2.f32 %v1374_v1 }
0x15e6   : > { %v1373_v10 = vmul.f32 -1.442695, %v1172_v9 }
0x15e7   : > { %v1162_v11 = vpop.xlane.xlu0 %1161 }
0x15e8   : > { %1594 = vpow2.f32 %v1373_v10  ;;  %v1174_v12 = vadd.f32 %v1860_v52, %v1162_v11 }
0x15ea   : > { %v1375_v14 = vmul.f32 -1.442695, %v1174_v12 }
0x15eb   : > { %v1116_v15 = vpop.permute.xlu0 %1115 }
0x15ec   : > { %1596 = vpow2.f32 %v1375_v14  ;;  %1118 = vst.msk [vmem:[#allocation3] sm:$0x3] %vm376_vm3, %v1116_v15 }
0x15ed   : > { %v1587_v16 = vpop.eup %1586 }
0x15ee   : > { %v1589_v18 = vpop.eup %1588  ;;  %v1201_v19 = vadd.f32 1.0, %v1587_v16 }
0x15ef   : > { %v1203_v21 = vadd.f32 1.0, %v1589_v18 }
0x15f0   : > { %1598 = vrcp.f32 %v1201_v19 }
0x15f1   : > { %v1591_v20 = vpop.eup %1590  ;;  %1600 = vrcp.f32 %v1200_v17 }
0x15f2   : > { %v1593_v22 = vpop.eup %1592  ;;  %v1202_v23 = vadd.f32 1.0, %v1591_v20 }
0x15f3   : > { %v1205_v26 = vadd.f32 1.0, %v1593_v22 }
0x15f4   : > { %1602 = vrcp.f32 %v1202_v23 }
0x15f5   : > { %v1595_v24 = vpop.eup %1594  ;;  %1604 = vrcp.f32 %v1203_v21 }
0x15f6   : > { %v1204_v27 = vadd.f32 1.0, %v1595_v24 }
0x15f8   : > { %1606 = vrcp.f32 %v1204_v27 }
0x15f9   : > { %v1597_v28 = vpop.eup %1596  ;;  %1608 = vrcp.f32 %v1205_v26 }
0x15fa   : > { %v1206_v31 = vadd.f32 1.0, %v1597_v28 }
0x15fc   : > { %1610 = vrcp.f32 %v1206_v31 }
0x15fd   : > { %v1599_v32 = vpop.eup %1598 }
0x15fe   : > { %v1601_v34 = vpop.eup %1600  ;;  %v1241_v35 = vrot.slane %v1599_v32, %v1236_v33 }
0x15ff   : > { %v1237_v37 = vrot.slane %v1601_v34, %v1236_v33 }
0x1601   : > { %v1603_v36 = vpop.eup %1602  ;;  %v1267_v40 = vsel %vm1266_vm4, %v1241_v35, %v1237_v37 }
0x1602   : > { %v1605_v38 = vpop.eup %1604  ;;  %v1245_v39 = vrot.slane %v1603_v36, %v1236_v33 }
0x1603   : > { %v1249_v43 = vrot.slane %v1605_v38, %v1236_v33 }
0x1604   : > { %v1269_v41 = vsel %vm1268_vm5, %v1245_v39, %v1267_v40 }
0x1605   : > { %v1607_v42 = vpop.eup %1606  ;;  %v1271_v45 = vsel %vm1270_vm6, %v1249_v43, %v1269_v41 }
0x1606   : > { %v1609_v44 = vpop.eup %1608  ;;  %v1253_v2 = vrot.slane %v1607_v42, %v1236_v33 }
0x1607   : > { %v1257_v47 = vrot.slane %v1609_v44, %v1236_v33 }
0x1608   : > { %v1273_v46 = vsel %vm1272_vm7, %v1253_v2, %v1271_v45 }
0x1609   : > { %v1611_v4 = vpop.eup %1610  ;;  %v1275_v48 = vsel %vm1274_vm8, %v1257_v47, %v1273_v46 }
0x160a   : > { %v1261_v5 = vrot.slane %v1611_v4, %v1236_v33 }
0x160c   : > { %v1277_v3 = vsel %vm1276_vm9, %v1261_v5, %v1275_v48 }
0x163a   : > { %v1165_v6 = vpop.xlane.xlu1 %1164 }
0x163b   : > { %v1175_v49 = vadd.f32 %v1860_v52, %v1165_v6 }
0x163d   : > { %v1376_v50 = vmul.f32 -1.442695, %v1175_v49 }
0x163f   : > { %1612 = vpow2.f32 %v1376_v50 }
0x164c   : > { %v1613_v51 = vpop.eup %1612 }
0x164d   : > { %v1207_v53 = vadd.f32 1.0, %v1613_v51 }
0x164f   : > { %1614 = vrcp.f32 %v1207_v53 }
0x165c   : > { %v1615_v54 = vpop.eup %1614 }
0x165d   : > { %v1265_v55 = vrot.slane %v1615_v54, %v1236_v33 }
0x165f   : > { %v1279_v56 = vsel %vm1278_vm10, %v1265_v55, %v1277_v3 }
0x1660   : > { %1282 = vst.msk [vmem:[%s1678_s30] sm:$0xff] %vm1281_vm11, %v1279_v56 }
0x1661 PF: > { %s17_s23 = sadd.s32 1, %s1622_s23  }
0x1662   : > { %p14_p6 = scmp.ge.s32.totalorder %s17_s23, 4  }
0x1664   :  { %16 = sbr.rel (!%p14_p6) target bundleno = 2 (0x2), region = 92 }

</bundles_post_ra>
